<compile_context>
chip_gen: v7x
topology: tpu7x:2x2x1
jax: 0.10.0
libtpu: 0.0.40
codegen_flags: <defaults>
</compile_context>

<pallas_src>
import jax
import jax.numpy as jnp
from jax.experimental import pallas as pl
from jax.experimental.pallas import tpu as pltpu

_MIN_LANES = 128


def _sigma_derivative_kernel(coeff2_ref, x_ref, o_ref):
    x = x_ref[...]
    c = coeff2_ref[0]
    # clip(coeff2 * x + 0.5, 0, 1)  ==  reference where/where formulation.
    o_ref[...] = jnp.clip(x.astype(jnp.float32) * c + 0.5, 0.0, 1.0).astype(o_ref.dtype)


def sigma_derivative(x, ddelta):
    """Elementwise smoothed-ReLU derivative computed in a Pallas TPU kernel.

    x: any shape, float dtype (NCHW in the reference module).
    ddelta: python float (> 0) or traced scalar.
    """
    if isinstance(ddelta, (int, float)) and ddelta <= 0:
        raise ValueError("sigma_derivative requires ddelta > 0")

    orig_shape = x.shape
    dtype = x.dtype
    total = x.size
    if total == 0:
        return x  # nothing to do on empty inputs

    itemsize = jnp.dtype(dtype).itemsize
    # Native sublane multiple: 8 for 32-bit, 16 for 16-bit, 32 for 8-bit.
    sub = {4: 8, 2: 16, 1: 32}.get(itemsize, 8)

    # coeff2 as a (1,) SMEM scalar (scalar prefetch) — no recompile per ddelta.
    coeff2 = jnp.asarray(1.0 / (2.0 * ddelta), dtype=jnp.float32).reshape(1)

    # Pick the widest lane-dense last dim that divides total (minor DMA win);
    # pad only when total is not even a multiple of 128 (ragged tail).
    lanes = _MIN_LANES
    for cand in (1024, 512, 256, 128):
        if total % cand == 0:
            lanes = cand
            break
    pad = (-total) % lanes

    x_flat = x.reshape(-1)
    if pad:
        x_flat = jnp.pad(x_flat, (0, pad))
    rows = (total + pad) // lanes
    x2d = x_flat.reshape(rows, lanes)

    # ~4 MiB blocks, rows rounded to the sublane multiple. Double-buffered
    # in + out = 16 MiB, inside the explicit 32 MiB VMEM limit below.
    target_bytes = 4 << 20
    tr = max(sub, (target_bytes // (lanes * itemsize)) // sub * sub)
    tr = min(tr, rows)  # if rows < sub this equals the full dim (allowed)
    if rows >= 2 * sub:
        # Guarantee >= 2 grid steps so v7x's two TensorCores both get work.
        tr = min(tr, max(sub, (rows // 2 // sub) * sub))
    grid = (pl.cdiv(rows, tr),)

    nbytes = rows * lanes * itemsize
    out2d = pl.pallas_call(
        _sigma_derivative_kernel,
        out_shape=jax.ShapeDtypeStruct((rows, lanes), dtype),
        grid_spec=pltpu.PrefetchScalarGridSpec(
            num_scalar_prefetch=1,
            grid=grid,
            in_specs=[pl.BlockSpec((tr, lanes), lambda i, c: (i, 0))],
            out_specs=pl.BlockSpec((tr, lanes), lambda i, c: (i, 0)),
        ),
        compiler_params=pltpu.CompilerParams(
            dimension_semantics=("parallel",),
            vmem_limit_bytes=32 * 1024 * 1024,
        ),
        cost_estimate=pl.CostEstimate(
            flops=total, transcendentals=0, bytes_accessed=2 * nbytes),
    )(coeff2, x2d)

    if pad:
        return out2d.reshape(-1)[:total].reshape(orig_shape)
    return out2d.reshape(orig_shape)


def sigma_derivative_ref(x, ddelta):
    coeff2 = 1.0 / (2.0 * ddelta)
    relu_deri = jnp.where(x > 0, jnp.ones_like(x), jnp.zeros_like(x))
    return jnp.where(jnp.abs(x) > ddelta, relu_deri, coeff2 * x + 0.5)


if __name__ == "__main__":
    key = jax.random.PRNGKey(0)
    ddelta = 0.5

    # NCHW input, small shape consistent with a conv-style module (aligned).
    x = jax.random.normal(key, (2, 4, 16, 16), dtype=jnp.float32)
    out = jax.block_until_ready(sigma_derivative(x, ddelta))
    ref = sigma_derivative_ref(x, ddelta)
    assert out.shape == x.shape and out.dtype == x.dtype
    assert jnp.allclose(out, ref, atol=1e-6, rtol=1e-6)

    # Ragged shape (exercises the pad/slice tail path).
    x2 = jax.random.normal(jax.random.PRNGKey(1), (3, 5, 7, 11), dtype=jnp.float32)
    out2 = jax.block_until_ready(sigma_derivative(x2, ddelta))
    ref2 = sigma_derivative_ref(x2, ddelta)
    assert out2.shape == x2.shape and out2.dtype == x2.dtype
    assert jnp.allclose(out2, ref2, atol=1e-6, rtol=1e-6)

    # Medium shape (exercises the multi-step parallel grid path).
    x3 = jax.random.normal(jax.random.PRNGKey(2), (8, 16, 32, 32), dtype=jnp.float32)
    out3 = jax.block_until_ready(sigma_derivative(x3, ddelta))
    ref3 = sigma_derivative_ref(x3, ddelta)
    assert out3.shape == x3.shape and out3.dtype == x3.dtype
    assert jnp.allclose(out3, ref3, atol=1e-6, rtol=1e-6)

    print("KERNEL_OK")
</pallas_src>

<mosaic_0001>
module attributes {stable_mosaic.version = 11 : i64} {
  func.func @_sigma_derivative_kernel(%arg0: i32, %arg1: memref<1xf32, #tpu.memory_space<smem>>, %arg2: memref<2x1024xf32, #tpu.memory_space<vmem>>, %arg3: memref<2x1024xf32, #tpu.memory_space<vmem>>) attributes {dimension_semantics = [#tpu.dimension_semantics<parallel>], iteration_bounds = array<i64: 1>, scalar_prefetch = 1 : i64, scratch_operands = 0 : i64, tpu.core_type = #tpu.core_type<tc>, window_params = [{transform_indices = @transform_0, window_bounds = array<i64: 2, 1024>}, {transform_indices = @transform_1, window_bounds = array<i64: 2, 1024>}]} {
    %c0 = arith.constant 0 : index
    %c0_0 = arith.constant 0 : index
    %0 = vector.load %arg2[%c0, %c0_0] : memref<2x1024xf32, #tpu.memory_space<vmem>>, vector<2x1024xf32>
    %c0_1 = arith.constant 0 : index
    %1 = memref.load %arg1[%c0_1] : memref<1xf32, #tpu.memory_space<smem>>
    %2 = vector.broadcast %1 : f32 to vector<2x1024xf32>
    %3 = arith.mulf %0, %2 : vector<2x1024xf32>
    %cst = arith.constant 5.000000e-01 : f32
    %4 = vector.broadcast %cst : f32 to vector<2x1024xf32>
    %5 = arith.addf %3, %4 : vector<2x1024xf32>
    %cst_2 = arith.constant 0.000000e+00 : f32
    %cst_3 = arith.constant 1.000000e+00 : f32
    %6 = vector.broadcast %cst_2 : f32 to vector<2x1024xf32>
    %7 = arith.maximumf %6, %5 : vector<2x1024xf32>
    %8 = vector.broadcast %cst_3 : f32 to vector<2x1024xf32>
    %9 = arith.minimumf %8, %7 : vector<2x1024xf32>
    %c0_4 = arith.constant 0 : index
    %c0_5 = arith.constant 0 : index
    %10 = vector.load %arg3[%c0_4, %c0_5] : memref<2x1024xf32, #tpu.memory_space<vmem>>, vector<2x1024xf32>
    tpu.vector_store %arg3[%c0_4, %c0_5], %9 {strides = array<i32>} : memref<2x1024xf32, #tpu.memory_space<vmem>>, vector<2x1024xf32>,
    return
  }
  func.func @transform_0(%arg0: i32, %arg1: memref<1xf32, #tpu.memory_space<smem>>) -> (i32, i32) {
    %c0_i32 = arith.constant 0 : i32
    %c0_i32_0 = arith.constant 0 : i32
    return %arg0, %c0_i32 : i32, i32
  }
  func.func @transform_1(%arg0: i32, %arg1: memref<1xf32, #tpu.memory_space<smem>>) -> (i32, i32) {
    %c0_i32 = arith.constant 0 : i32
    %c0_i32_0 = arith.constant 0 : i32
    return %arg0, %c0_i32 : i32, i32
  }
}

</mosaic_0001>

<bundles_post_ra>
// kernel: tpu_custom_call.1
= control target key start
LH: loop header
LB: loop body
LE: loop exit
PB: predicated region body
PF: predicated region fallthrough
CT: control target
= control target key end

     0   :  { %8 = vsyncpa [#allocation5], 0  ;;  %s146_s0 = inlined_call_operand.<no memory space> [shape: f32[1], index: 0, kind: input, shape index: {}]   ;;  %s147_s1 = inlined_call_operand.hbm [shape: f32[2,1024], index: 1, kind: input, shape index: {}]   ;;  %s148_s2 = inlined_call_operand.hbm [shape: f32[2,1024], index: 2, kind: output, shape index: {}]  }
   0x1   :  { %9 = vsyncpa [#allocation6], 0  ;;  %s102_s9 = smov [#allocation4]   ;;  %s54_s13 = scalar_lea.hbm %s147_s1, 256 }
   0x2   :  { %s16_s10 = sshll.u32 %s102_s9, 4  ;;  %p55_p0 = scmp.ne.s32.totalorder %s147_s1, %s54_s13  ;;  %s17_s10 = int_to_ptr.vmem [resolvable:$true] %s16_s10 }
   0x3   :  { %p58_p1 = scmp.lt.u32.totalorder %s54_s13, %s147_s1 }
   0x5   :  { %p60_p2 = pnand %p58_p1, %p55_p0 }
   0x7   :  { %63 = shalt.err (!%p60_p2)
}
   0x8   :  { %s64_s18 = scalar_lea.vmem %s17_s10, 256  ;;  %p69_p4 = scmp.lt.s32.totalorder %s17_s10, %s17_s10 }
   0x9   :  { %p65_p3 = scmp.ne.s32.totalorder %s17_s10, %s64_s18  ;;  %p70_p5 = scmp.lt.s32.totalorder %s64_s18, %s64_s18 }
   0xb   :  { %p71_p6 = por %p70_p5, %p69_p4 }
   0xd   :  { %p72_p7 = pnand %p71_p6, %p65_p3 }
   0xf   :  { %75 = shalt.err (!%p72_p7)
}
  0x10   :  { %19 = dma.hbm_to_vmem [thread:$0]  %s147_s1, 256, %s17_s10, [#allocation5]  }
  0x11   :  { %98 = dma.done.wait [#allocation5], 256  }
  0x12   :  { %99 = vsyncadd [#allocation5], 4294967040  ;;  %v26_v0 = vstv %s146_s0  ;;  %v23_v1 = vld [vmem:[#allocation4] sm:$0xff]  ;;  %v24_v2 = vld [vmem:[#allocation4 + $0x8] sm:$0xff]  ;;  %s103_s23 = smov [#allocation7]  }
  0x13   :  { %v27_v3 = vmul.f32 %v26_v0, %v23_v1  ;;  %v28_v4 = vmul.f32 %v26_v0, %v24_v2  ;;  %s43_s24 = sshll.u32 %s103_s23, 4  ;;  %s44_s24 = int_to_ptr.vmem [resolvable:$true] %s43_s24 }
  0x14   :  { %s76_s1 = scalar_lea.vmem %s44_s24, 256  ;;  %p81_p9 = scmp.lt.s32.totalorder %s44_s24, %s44_s24 }
  0x15   :  { %v29_v5 = vadd.f32 0.5, %v27_v3  ;;  %v30_v6 = vadd.f32 0.5, %v28_v4  ;;  %p77_p8 = scmp.ne.s32.totalorder %s44_s24, %s76_s1  ;;  %p82_p10 = scmp.lt.s32.totalorder %s76_s1, %s76_s1 }
  0x17   :  { %v31_v7 = vmax.f32 %v29_v5, 0.0  ;;  %v32_v8 = vmax.f32 %v30_v6, 0.0  ;;  %p83_p11 = por %p82_p10, %p81_p9 }
  0x19   :  { %v33_v9 = vmin.f32 %v31_v7, 1.0  ;;  %v34_v10 = vmin.f32 %v32_v8, 1.0  ;;  %p84_p12 = pnand %p83_p11, %p77_p8 }
  0x1b   :  { %35 = vst [vmem:[#allocation7] sm:$0xff] %v33_v9  ;;  %36 = vst [vmem:[#allocation7 + $0x8] sm:$0xff] %v34_v10 }
  0x1c   :  { %87 = shalt.err (!%p84_p12)
}
  0x1d   :  { %s88_s26 = scalar_lea.hbm %s148_s2, 256 }
  0x1e   :  { %p89_p13 = scmp.ne.s32.totalorder %s148_s2, %s88_s26  ;;  %p92_p0 = scmp.lt.u32.totalorder %s88_s26, %s148_s2 }
  0x20   :  { %p94_p1 = pnand %p92_p0, %p89_p13 }
  0x22   :  { %97 = shalt.err (!%p94_p1)
}
  0x23   :  { %46 = dma.vmem_to_hbm [thread:$0]  %s44_s24, 256, %s148_s2, [#allocation6]  }
  0x24   :  { %100 = dma.done.wait [#allocation6], 256  }
  0x25   :  { %101 = vsyncadd [#allocation6], 4294967040 }
  0x26   :  { %50 = vsyncpa [#allocation5], 1 }
  0x27   :  { %51 = vsyncpa [#allocation6], 1 }

</bundles_post_ra>
